<compile_context>
chip_gen: v7x
topology: tpu7x:2x2x1
jax: 0.10.0
libtpu: 0.0.40
codegen_flags: <defaults>
</compile_context>

<pallas_src>
import functools

import jax
import jax.numpy as jnp
from jax.experimental import pallas as pl
from jax.experimental.pallas import tpu as pltpu


def _se_kernel(x_ref, w1t_ref, w2t_ref, o_ref, *, hw_true):
    # x_ref/o_ref: (bt, C, HWp)   w1t_ref: (C, C_red)   w2t_ref: (C_red, C)
    x = x_ref[...]                                    # keep input dtype; no full f32 copy

    # Squeeze: accumulate the spatial sum in f32 (lane-axis reduce on the XLU).
    # Padding lanes are zero, so they do not perturb the sum; divide by the
    # *true* spatial size, not the padded width.
    pooled = jnp.sum(x.astype(jnp.float32), axis=2) * (1.0 / hw_true)        # (bt, C)

    # Excitation: fc1 -> ReLU -> fc2 -> sigmoid, batched over `bt` on the MXU.
    y1 = jnp.dot(pooled, w1t_ref[...], preferred_element_type=jnp.float32)   # (bt, C_red)
    y1 = jnp.maximum(y1, 0.0)
    y2 = jnp.dot(y1, w2t_ref[...], preferred_element_type=jnp.float32)       # (bt, C)
    gate = jax.nn.sigmoid(y2)                                                # (bt, C)

    # Scale: broadcast the gate over the spatial (lane) axis, in the input
    # dtype (bf16 VPU on v6e/v7x; no extra full-precision copy of the tile).
    o_ref[...] = (x * gate[:, :, None].astype(x.dtype)).astype(o_ref.dtype)


def _choose_batch_tile(B, per_batch_bytes, target_bytes=2 << 20):
    """Pick how many batch elements to pack per grid step."""
    bt = max(1, min(B, target_bytes // max(per_batch_bytes, 1)))
    if B >= 2:
        bt = min(bt, B // 2)   # keep grid extent >= 2 so both v7x TCs get work
    bt = max(1, bt)
    while B % bt:              # bt must evenly divide B
        bt -= 1
    return bt


def se_layer(x, w1, w2):
    """x: (B, C, H, W); w1: (C//r, C); w2: (C, C//r).  Both Linears bias-free."""
    B, C, H, W = x.shape
    HW = H * W
    c_red = w1.shape[0]
    itemsize = jnp.dtype(x.dtype).itemsize

    # Lane-dense output: pad the flattened spatial axis up to a multiple of 128
    # so stores are unmasked vst (biggest measured lever; padding is zeros, so
    # the pooled mean is unaffected).
    HWp = ((HW + 127) // 128) * 128
    x_flat = x.reshape(B, C, HW)
    if HWp != HW:
        x_flat = jnp.pad(x_flat, ((0, 0), (0, 0), (0, HWp - HW)))

    bt = _choose_batch_tile(B, C * HWp * itemsize)
    grid = (B // bt,)

    # Pre-transpose the tiny weights once in the wrapper so the kernel runs
    # plain row-major (bt, C) @ (C, C_red) / (bt, C_red) @ (C_red, C) matmuls.
    w1t = w1.T   # (C, C_red)
    w2t = w2.T   # (C_red, C)

    # Explicit VMEM budget: in + out tiles, double-buffered, plus weights and
    # slack.  Capped at 48 MiB so it stays within v7x's 64 MiB physical VMEM;
    # floor of 16 MiB covers v5e's smaller scoped default.
    block_bytes = bt * C * HWp * itemsize
    w_bytes = (w1.size + w2.size) * jnp.dtype(w1.dtype).itemsize
    vmem_limit = int(min(max(4 * block_bytes + w_bytes + (4 << 20), 16 << 20), 48 << 20))

    # Advisory cost hint: this is essentially a bandwidth-bound elementwise op.
    cost = pl.CostEstimate(
        flops=2 * B * C * c_red * 2 + 2 * B * C * HW,   # two GEMMs + pool add + scale mul
        transcendentals=B * C,                          # sigmoid
        bytes_accessed=2 * B * C * HW * itemsize + w_bytes,
    )

    out_flat = pl.pallas_call(
        functools.partial(_se_kernel, hw_true=float(HW)),
        out_shape=jax.ShapeDtypeStruct((B, C, HWp), x.dtype),
        grid_spec=pltpu.PrefetchScalarGridSpec(
            num_scalar_prefetch=0,
            grid=grid,
            in_specs=[
                pl.BlockSpec((bt, C, HWp), lambda b: (b, 0, 0)),
                pl.BlockSpec((C, c_red), lambda b: (0, 0)),
                pl.BlockSpec((c_red, C), lambda b: (0, 0)),
            ],
            out_specs=pl.BlockSpec((bt, C, HWp), lambda b: (b, 0, 0)),
        ),
        compiler_params=pltpu.CompilerParams(
            dimension_semantics=("parallel",),
            vmem_limit_bytes=vmem_limit,
        ),
        cost_estimate=cost,
    )(x_flat, w1t, w2t)

    if HWp != HW:
        out_flat = out_flat[..., :HW]
    return out_flat.reshape(B, C, H, W)


def se_layer_ref(x, w1, w2):
    """Pure-JAX reference matching the PyTorch forward exactly."""
    y = jnp.mean(x, axis=(2, 3))                 # (B, C)
    y = jnp.maximum(y @ w1.T, 0.0)               # (B, C//r)
    y = jax.nn.sigmoid(y @ w2.T)                 # (B, C)
    return x * y[:, :, None, None]


if __name__ == "__main__":
    B, C, H, W = 2, 64, 8, 8
    reduction = 16
    c_red = C // reduction

    key = jax.random.PRNGKey(0)
    kx, k1, k2 = jax.random.split(key, 3)

    x = jax.random.normal(kx, (B, C, H, W), dtype=jnp.float32)
    # Deterministic synthetic weights (Linear weight shapes: (out, in), no bias).
    w1 = jax.random.normal(k1, (c_red, C), dtype=jnp.float32) * 0.1
    w2 = jax.random.normal(k2, (C, c_red), dtype=jnp.float32) * 0.1

    out = jax.block_until_ready(se_layer(x, w1, w2))

    ref = se_layer_ref(x, w1, w2)
    assert jnp.allclose(out, ref, atol=1e-5, rtol=1e-5), "mismatch vs reference"

    print("KERNEL_OK")
</pallas_src>

<mosaic_0001>
module attributes {stable_mosaic.version = 11 : i64} {
  func.func @_se_kernel(%arg0: i32, %arg1: memref<1x64x128xf32, #tpu.memory_space<vmem>>, %arg2: memref<64x4xf32, #tpu.memory_space<vmem>>, %arg3: memref<4x64xf32, #tpu.memory_space<vmem>>, %arg4: memref<1x64x128xf32, #tpu.memory_space<vmem>>) attributes {dimension_semantics = [#tpu.dimension_semantics<parallel>], iteration_bounds = array<i64: 2>, scalar_prefetch = 0 : i64, scratch_operands = 0 : i64, tpu.core_type = #tpu.core_type<tc>, window_params = [{transform_indices = @transform_0, window_bounds = array<i64: 1, 64, 128>}, {pipeline_mode = #tpu.pipeline_mode<synchronous>, transform_indices = @transform_1, window_bounds = array<i64: 64, 4>}, {pipeline_mode = #tpu.pipeline_mode<synchronous>, transform_indices = @transform_2, window_bounds = array<i64: 4, 64>}, {transform_indices = @transform_3, window_bounds = array<i64: 1, 64, 128>}]} {
    %c0 = arith.constant 0 : index
    %c0_0 = arith.constant 0 : index
    %c0_1 = arith.constant 0 : index
    %0 = vector.load %arg1[%c0, %c0_0, %c0_1] : memref<1x64x128xf32, #tpu.memory_space<vmem>>, vector<1x64x128xf32>
    %cst = arith.constant dense<0.000000e+00> : vector<1x64xf32>
    %1 = vector.multi_reduction <add>, %0, %cst [2] : vector<1x64x128xf32> to vector<1x64xf32>
    %cst_2 = arith.constant 1.562500e-02 : f32
    %2 = vector.broadcast %cst_2 : f32 to vector<1x64xf32>
    %3 = arith.mulf %1, %2 : vector<1x64xf32>
    %c0_3 = arith.constant 0 : index
    %c0_4 = arith.constant 0 : index
    %4 = vector.load %arg2[%c0_3, %c0_4] : memref<64x4xf32, #tpu.memory_space<vmem>>, vector<64x4xf32>
    %cst_5 = arith.constant dense<0.000000e+00> : vector<1x4xf32>
    %5 = tpu.matmul %3, %4, %cst_5 {dimension_numbers = #tpu.dot_dimension_numbers<[1], [0], [0], [1], [0, 0, 1, 1], [], []>} : vector<1x64xf32>, vector<64x4xf32>, vector<1x4xf32> -> vector<1x4xf32>
    %cst_6 = arith.constant 0.000000e+00 : f32
    %6 = vector.broadcast %cst_6 : f32 to vector<1x4xf32>
    %7 = arith.maximumf %5, %6 : vector<1x4xf32>
    %c0_7 = arith.constant 0 : index
    %c0_8 = arith.constant 0 : index
    %8 = vector.load %arg3[%c0_7, %c0_8] : memref<4x64xf32, #tpu.memory_space<vmem>>, vector<4x64xf32>
    %cst_9 = arith.constant dense<0.000000e+00> : vector<1x64xf32>
    %9 = tpu.matmul %7, %8, %cst_9 {dimension_numbers = #tpu.dot_dimension_numbers<[1], [0], [0], [1], [0, 0, 1, 1], [], []>} : vector<1x4xf32>, vector<4x64xf32>, vector<1x64xf32> -> vector<1x64xf32>
    %10 = arith.negf %9 : vector<1x64xf32>
    %11 = math.exp %10 : vector<1x64xf32>
    %cst_10 = arith.constant 1.000000e+00 : f32
    %12 = vector.broadcast %cst_10 : f32 to vector<1x64xf32>
    %13 = arith.addf %12, %11 : vector<1x64xf32>
    %14 = arith.divf %12, %13 : vector<1x64xf32>
    %15 = vector.shape_cast %14 : vector<1x64xf32> to vector<1x64x1xf32>
    %16 = vector.broadcast %15 : vector<1x64x1xf32> to vector<1x64x128xf32>
    %17 = arith.mulf %0, %16 : vector<1x64x128xf32>
    %c0_11 = arith.constant 0 : index
    %c0_12 = arith.constant 0 : index
    %c0_13 = arith.constant 0 : index
    %18 = vector.load %arg4[%c0_11, %c0_12, %c0_13] : memref<1x64x128xf32, #tpu.memory_space<vmem>>, vector<1x64x128xf32>
    tpu.vector_store %arg4[%c0_11, %c0_12, %c0_13], %17 {strides = array<i32>} : memref<1x64x128xf32, #tpu.memory_space<vmem>>, vector<1x64x128xf32>,
    return
  }
  func.func @transform_0(%arg0: i32) -> (i32, i32, i32) {
    %c0_i32 = arith.constant 0 : i32
    %c0_i32_0 = arith.constant 0 : i32
    %c0_i32_1 = arith.constant 0 : i32
    return %arg0, %c0_i32, %c0_i32_0 : i32, i32, i32
  }
  func.func @transform_1(%arg0: i32) -> (i32, i32) {
    %c0_i32 = arith.constant 0 : i32
    %c0_i32_0 = arith.constant 0 : i32
    %c0_i32_1 = arith.constant 0 : i32
    return %c0_i32, %c0_i32_0 : i32, i32
  }
  func.func @transform_2(%arg0: i32) -> (i32, i32) {
    %c0_i32 = arith.constant 0 : i32
    %c0_i32_0 = arith.constant 0 : i32
    %c0_i32_1 = arith.constant 0 : i32
    return %c0_i32, %c0_i32_0 : i32, i32
  }
  func.func @transform_3(%arg0: i32) -> (i32, i32, i32) {
    %c0_i32 = arith.constant 0 : i32
    %c0_i32_0 = arith.constant 0 : i32
    %c0_i32_1 = arith.constant 0 : i32
    return %arg0, %c0_i32, %c0_i32_0 : i32, i32, i32
  }
}

</mosaic_0001>

<bundles_post_ra>
// kernel: tpu_custom_call.1
= control target key start
LH: loop header
LB: loop body
LE: loop exit
PB: predicated region body
PF: predicated region fallthrough
CT: control target
= control target key end

     0   :  { %8 = vsyncpa [#allocation3], 0  ;;  %s1076_s0 = inlined_call_operand.hbm [shape: f32[2,64,128], index: 0, kind: input, shape index: {}]   ;;  %s1077_s1 = inlined_call_operand.vmem [shape: f32[64,4], index: 1, kind: input, shape index: {}]   ;;  %s1078_s2 = inlined_call_operand.vmem [shape: f32[4,64], index: 2, kind: input, shape index: {}]   ;;  %s1079_s3 = inlined_call_operand.hbm [shape: f32[2,64,128], index: 3, kind: output, shape index: {}]  }
   0x1   :  { %10 = vsyncpa [#allocation3 + $0x1], 0 }
   0x2   :  { %11 = vsyncpa [#allocation4], 0 }
   0x3   :  { %13 = vsyncpa [#allocation4 + $0x1], 0  ;;  %s840_s12 = smov 0   ;;  %s842_s13 = smov 0  }
   0x4   :  { %s844_s14 = smov 0   ;;  %s846_s15 = smov 0  }
   0x5 LB: > { %s861_s16 = sadd.s32 4294967295, %s809_s15   ;;  %s589_s17 = sadd.s32 4294967294, %s809_s15   ;;  %s809_s15 = sphi %s846_s15, %s1092_s15   ;;  %s805_s14 = sphi %s844_s14, %s1091_s14   ;;  %s801_s13 = sphi %s842_s13, %s1090_s13   ;;  %s797_s12 = sphi %s840_s12, %s1089_s12  }
   0x6   : > { %s865_s18 = sadd.s32 1, %s809_s15   ;;  %s26_s19 = sadd.s32 1, %s805_s14 }
   0x7   : > { %s23_s20 = ssub.s32 %s809_s15, %s865_s18  ;;  %p33_p0 = scmp.ne.s32.totalorder %s805_s14, %s801_s13 }
   0x8   : > { %p24_p1 = scmp.eq.s32.totalorder %s23_s20, 0  ;;  %p34_p2 = scmp.eq.s32.totalorder %s809_s15, 0 }
   0x9   : > { %p39_p3 = scmp.ne.s32.totalorder %s801_s13, %s797_s12  ;;  %p40_p4 = scmp.eq.s32.totalorder %s861_s16, 0 }
   0xa   : > { %s877_s21 = scalar_select %p24_p1, %s805_s14, %s26_s19  }
   0xb   : > { %p879_p5 = por %p34_p2, %p33_p0  ;;  %p883_p6 = por %p40_p4, %p39_p3 }
   0xc   : > { %p105_p7 = scmp.eq.s32.totalorder %s861_s16, 1  ;;  %p111_p8 = scmp.eq.s32.totalorder %s589_s17, 1 }
   0xd   : > { %p668_p10 = scmp.lt.s32.totalorder %s809_s15, 2  ;;  %s137_s26 = sand.u32 1, %s805_s14  }
   0xe   : > { %p890_p11 = por %p105_p7, %p33_p0  ;;  %p894_p12 = por %p111_p8, %p39_p3 }
   0xf   : > { %s607_s27 = sshll.u32 %s809_s15, 10  ;;  %s592_s28 = sshll.u32 %s137_s26, 6 }
  0x10   : > { %s1083_s24 = scalar_select %p890_p11, 1, 0 }
  0x11   : > { %s1084_s25 = scalar_select %p894_p12, 1, 0 }
  0x12   : > { %s903_s4 = scalar_lea.hbm %s1076_s0, %s607_s27  ;;  %s141_s5 = scalar_lea.vmem [#allocation2], %s592_s28 }
  0x13   : > { %s148_s6 = sshll.u32 %s141_s5, 4  ;;  %p907_p13 = pnand %p668_p10, %p879_p5  ;;  %s911_s6 = int_to_ptr.vmem [resolvable:$true] %s148_s6 }
  0x14   : > { %s913_s8 = scalar_lea.sflag [#allocation3], %s137_s26  ;;  %s713_s9 = scalar_lea.hbm %s903_s4, 1024 }
  0x15   : > { %p714_p0 = scmp.ne.s32.totalorder %s903_s4, %s713_s9  ;;  %p715_p1 = pneg %p907_p13 }
  0x16   : > { %s718_s17 = scalar_lea.hbm %s1076_s0, 2048  ;;  %p719_p4 = scmp.lt.u32.totalorder %s903_s4, %s1076_s0 }
  0x17   : > { %p716_p2 = pnand %p715_p1, %p714_p0  ;;  %p720_p5 = scmp.lt.u32.totalorder %s718_s17, %s713_s9 }
  0x18   : > { %p722_p8 = scmp.lt.u32.totalorder %s713_s9, %s903_s4 }
  0x19   : > { %p717_p3 = pneg %p716_p2  ;;  %p721_p7 = por %p720_p5, %p719_p4 }
  0x1b   : > { %p723_p10 = por %p722_p8, %p721_p7 }
  0x1d   : > { %p724_p9 = pnand %p723_p10, %p717_p3 }
  0x1f   : > { %727 = shalt.err (!%p724_p9)
}
  0x20   : > { %s728_s22 = scalar_lea.vmem %s911_s6, 1024  ;;  %s811_s26 = smov [#allocation2]  }
  0x21   : > { %p729_p0 = scmp.ne.s32.totalorder %s911_s6, %s728_s22  ;;  %s733_s27 = sshll.u32 %s811_s26, 4  ;;  %s734_s27 = int_to_ptr.vmem [resolvable:$false] %s733_s27 }
  0x22   : > { %s735_s28 = scalar_lea.vmem %s734_s27, 2048  ;;  %p736_p11 = scmp.lt.s32.totalorder %s911_s6, %s734_s27 }
  0x23   : > { %p731_p2 = pnand %p729_p0, %p715_p1  ;;  %p737_p4 = scmp.lt.s32.totalorder %s735_s28, %s728_s22 }
  0x25   : > { %p732_p12 = pneg %p731_p2  ;;  %p738_p5 = por %p737_p4, %p736_p11 }
  0x27   : > { %p739_p7 = pnand %p738_p5, %p732_p12 }
  0x29   : > { %742 = shalt.err (!%p739_p7)
}
  0x2a   : > { %s812_s29 = smov 128   ;;  %s813_s30 = smov 8  }
  0x2b   : > { %663 = dma.hbm_to_vmem [thread:$0]  (!%p907_p13), %s903_s4, 1024, %s911_s6, %s913_s8, %s812_s29, %s812_s29, %s813_s30  }
  0x2c   : > { %p595_p9 = scmp.ge.s32.totalorder %s809_s15, 1  ;;  %p156_p1 = scmp.lt.s32.totalorder %s809_s15, 3 }
  0x2e   : > { %p157_p3 = pnand %p595_p9, %p156_p1 }
  0x2f   : > { %s944_s5 = sand.u32 (!%p157_p3), 1, %s801_s13  }
  0x30   : > { %160 = sbr.rel (%p157_p3) target bundleno = 819 (0x333), region = 32  ;;  %s596_s9 = sshll.u32 (!%p157_p3), %s944_s5, 6 }
  0x31   : > { %s163_s10 = scalar_lea.sflag (!%p157_p3), [#allocation3], %s944_s5  ;;  %s166_s11 = scalar_lea.vmem (!%p157_p3), [#allocation2], %s596_s9 }
  0x37   : > { %788 = dma.done.wait (%p883_p6), %s163_s10, 1024  }
  0x38   : > { %790 = vsyncadd (%p883_p6), %s163_s10, 4294966272  ;;  %v954_v0 = vld [vmem:[%s166_s11] sm:$0xff]  ;;  %v956_v1 = vld [vmem:[%s166_s11 + $0x10] sm:$0xff]  ;;  %v814_v11 = vmov 0.0|0.0   ;;  %vm815_vm0 = vmmov 0   ;;  %v816_v21 = vmov 0.0   ;;  %v237_v22 = vlaneseq }
  0x39   : > { %197 = vadd.xlane.f32.xlu0 %v954_v0  ;;  %201 = vadd.xlane.f32.xlu1 %v956_v1  ;;  %v960_v2 = vld [vmem:[%s166_s11 + $0x8] sm:$0xff]  ;;  %v962_v3 = vld [vmem:[%s166_s11 + $0x18] sm:$0xff]  ;;  %v966_v4 = vld [vmem:[%s166_s11 + $0x20] sm:$0xff]  ;;  %vm248_vm1 = vcmask 130112   ;;  %vm255_vm2 = vcmask 195712   ;;  %vm262_vm3 = vcmask 261312  }
  0x3a   : > { %v968_v5 = vld [vmem:[%s166_s11 + $0x28] sm:$0xff]  ;;  %v972_v6 = vld [vmem:[%s166_s11 + $0x30] sm:$0xff]  ;;  %v974_v7 = vld [vmem:[%s166_s11 + $0x38] sm:$0xff]  ;;  %644 = vmatprep.subr.bf16.mxu0 %v814_v11  ;;  %636 = vmatprep.mubr.msk.f32.mxu0 %vm815_vm0, %v816_v21  ;;  %v238_v23 = vand.u32 127, %v237_v22  ;;  %v1002_v24 = vshrl.u32 %v237_v22, 7  ;;  %vm269_vm4 = vcmask 326912  }
  0x3b   : > { %v221_v8 = vld [vmem:[%s1077_s1] sm:$0xff]  ;;  %v222_v9 = vld [vmem:[%s1077_s1 + $0x8] sm:$0xff]  ;;  %v223_v12 = vld [vmem:[%s1077_s1 + $0x10] sm:$0xff]  ;;  %639 = vmatprep.subr.mxu1 %v816_v21  ;;  %641 = vmatprep.mubr.msk.f32.mxu1 %vm815_vm0, %v816_v21  ;;  %vm276_vm5 = vcmask 392512   ;;  %vm283_vm6 = vcmask 458112   ;;  %vm290_vm7 = vcmask 523712  }
  0x3c   : > { %v645_v10 = vpack.c.bf16 %v222_v9, %v221_v8  ;;  %v224_v13 = vld [vmem:[%s1077_s1 + $0x18] sm:$0xff]  ;;  %v225_v15 = vld [vmem:[%s1077_s1 + $0x20] sm:$0xff]  ;;  %v226_v16 = vld [vmem:[%s1077_s1 + $0x28] sm:$0xff]  ;;  %v243_v25 = vadd.s32 4294967288, %v238_v23  ;;  %v257_v26 = vadd.s32 4294967272, %v238_v23  ;;  %v250_v28 = vadd.s32 4294967280, %v238_v23 }
  0x3d   : > { %199 = vadd.xlane.f32.xlu0 %v960_v2  ;;  %203 = vadd.xlane.f32.xlu1 %v962_v3  ;;  %v648_v14 = vpack.c.bf16 %v224_v13, %v223_v12  ;;  %v651_v17 = vpack.c.bf16 %v226_v16, %v225_v15  ;;  %v227_v18 = vld [vmem:[%s1077_s1 + $0x30] sm:$0xff]  ;;  %v228_v19 = vld [vmem:[%s1077_s1 + $0x38] sm:$0xff]  ;;  %v264_v30 = vadd.s32 4294967264, %v238_v23  ;;  %v241_v31 = vsub.s32 %v238_v23, %v1002_v24  ;;  %v366_v15 = vld [vmem:[%s1078_s2] sm:$0xf]  ;;  %s188_s6 = scalar_lea.vmem [#allocation5], %s596_s9 }
  0x3e   : > { %646 = vmatpush3.bf16.msra.mxu0 %v645_v10  ;;  %v654_v20 = vpack.c.bf16 %v228_v19, %v227_v18  ;;  %v246_v33 = vsub.s32 %v243_v25, %v1002_v24  ;;  %v260_v34 = vsub.s32 %v257_v26, %v1002_v24  ;;  %v253_v35 = vsub.s32 %v250_v28, %v1002_v24  ;;  %s516_s9 = sshll.u32 %s188_s6, 4  ;;  %s608_s7 = sshll.u32 %s861_s16, 10  ;;  %s1026_s9 = int_to_ptr.vmem [resolvable:$true] %s516_s9 }
  0x3f   : > { %647 = vmatprep.subr.bf16.mxu0 %v814_v11  ;;  %v271_v39 = vadd.s32 4294967256, %v238_v23  ;;  %v267_v42 = vsub.s32 %v264_v30, %v1002_v24  ;;  %v278_v43 = vadd.s32 4294967248, %v238_v23  ;;  %v285_v47 = vadd.s32 4294967240, %v238_v23  ;;  %s1031_s19 = scalar_lea.hbm %s1079_s3, %s608_s7  ;;  %s503_s20 = scalar_lea.sflag [#allocation4], %s944_s5 }
  0x40   : > { %vm292_vm8 = vcmask 523264   ;;  %vm371_vm9 = vcmask 1043456   ;;  %vm367_vm10 = vcmask 31744   ;;  %v453_v25 = vsub.s32 0, %v1002_v24  ;;  %s743_s22 = scalar_lea.vmem %s1026_s9, 1024  ;;  %p1086_p11 = scmp.ne.s32.totalorder %s1083_s24, 0 }
  0x41   : > { %205 = vadd.xlane.f32.xlu0 %v966_v4  ;;  %207 = vadd.xlane.f32.xlu1 %v968_v5  ;;  %v274_v50 = vsub.s32 %v271_v39, %v1002_v24  ;;  %v281_v58 = vsub.s32 %v278_v43, %v1002_v24  ;;  %v288_v59 = vsub.s32 %v285_v47, %v1002_v24  ;;  %p744_p6 = scmp.ne.s32.totalorder %s1026_s9, %s743_s22  ;;  %s817_s16 = smov [#allocation5]  }
  0x42   : > { %649 = vmatpush3.bf16.msra.mxu0 %v648_v14  ;;  %640 = vmatpush3.msk.msra.mxu1 %vm371_vm9, %v366_v15  ;;  %s747_s26 = sshll.u32 %s817_s16, 4  ;;  %s748_s26 = int_to_ptr.vmem [resolvable:$false] %s747_s26 }
  0x43   : > { %650 = vmatprep.subr.bf16.mxu0 %v814_v11  ;;  %p745_p12 = pnand %p744_p6, %p1086_p11  ;;  %s749_s27 = scalar_lea.vmem %s748_s26, 2048 }
  0x44   : > { %p750_p8 = scmp.lt.s32.totalorder %s1026_s9, %s748_s26  ;;  %p751_p10 = scmp.lt.s32.totalorder %s749_s27, %s743_s22 }
  0x45   : > { %209 = vadd.xlane.f32.xlu0 %v972_v6  ;;  %211 = vadd.xlane.f32.xlu1 %v974_v7  ;;  %p746_p13 = pneg %p745_p12 }
  0x46   : > { %652 = vmatpush3.bf16.msra.mxu0 %v651_v17  ;;  %p752_p0 = por %p751_p10, %p750_p8 }
  0x47   : > { %653 = vmatprep.subr.bf16.mxu0 %v814_v11 }
  0x48   : > { %p753_p2 = pnand %p752_p0, %p746_p13 }
  0x4a   : > { %655 = vmatpush3.bf16.msra.mxu0 %v654_v20 }
  0xc6   : > { %v198_v27 = vpop.xlane.xlu0 %197  ;;  %v202_v29 = vpop.xlane.xlu1 %201 }
  0xc7   : > { %v213_v32 = vmul.f32 0.015625, %v198_v27  ;;  %v215_v36 = vmul.f32 0.015625, %v202_v29 }
  0xc9   : > { %v242_v44 = vrot.slane %v213_v32, %v241_v31  ;;  %v254_v48 = vrot.slane %v215_v36, %v253_v35 }
  0xca   : > { %v200_v37 = vpop.xlane.xlu0 %199  ;;  %v204_v38 = vpop.xlane.xlu1 %203 }
  0xcb   : > { %v214_v40 = vmul.f32 0.015625, %v200_v37  ;;  %v216_v41 = vmul.f32 0.015625, %v204_v38 }
  0xcd   : > { %v247_v45 = vrot.slane %v214_v40, %v246_v33  ;;  %v261_v46 = vrot.slane %v216_v41, %v260_v34 }
  0xce   : > { %v206_v49 = vpop.xlane.xlu0 %205  ;;  %v208_v51 = vpop.xlane.xlu1 %207 }
  0xcf   : > { %v249_v52 = vsel %vm248_vm1, %v247_v45, %v242_v44  ;;  %v217_v53 = vmul.f32 0.015625, %v206_v49  ;;  %v218_v54 = vmul.f32 0.015625, %v208_v51 }
  0xd0   : > { %v256_v55 = vsel %vm255_vm2, %v254_v48, %v249_v52 }
  0xd1   : > { %v263_v56 = vsel %vm262_vm3, %v261_v46, %v256_v55  ;;  %v268_v57 = vrot.slane %v217_v53, %v267_v42  ;;  %v275_v60 = vrot.slane %v218_v54, %v274_v50 }
  0xd2   : > { %v210_v61 = vpop.xlane.xlu0 %209  ;;  %v212_v62 = vpop.xlane.xlu1 %211 }
  0xd3   : > { %v270_v63 = vsel %vm269_vm4, %v268_v57, %v263_v56  ;;  %v219_v8 = vmul.f32 0.015625, %v210_v61  ;;  %v220_v9 = vmul.f32 0.015625, %v212_v62 }
  0xd4   : > { %v277_v12 = vsel %vm276_vm5, %v275_v60, %v270_v63 }
  0xd5   : > { %v282_v10 = vrot.slane %v219_v8, %v281_v58  ;;  %v289_v11 = vrot.slane %v220_v9, %v288_v59 }
  0xd7   : > { %v284_v13 = vsel %vm283_vm6, %v282_v10, %v277_v12 }
  0xd8   : > { %v291_v14 = vsel %vm290_vm7, %v289_v11, %v284_v13 }
  0xd9   : > { %637 = vmatmul.mubr.msk.f32.vlgmr.msra.gmra.mrb[0].mxu0 %vm292_vm8, %v291_v14 }
 0x1ac   : > { %v361_v16 = vpop.f32.mrb[0].mxu0 }
 0x1ad   : > { %v365_v17 = vmax.f32 %v361_v16, 0.0  ;;  %v638_v18 = vpop.f32.mrb[1].mxu0 }
 0x1af   : > { %642 = vmatmul.mubr.msk.f32.vlgmr.msra.gmra.mrb[0].mxu1 %vm367_vm10, %v365_v17 }
 0x282   : > { %v441_v19 = vpop.f32.mrb[0].mxu1 }
 0x283   : > { %v601_v20 = vmul.f32 -1.442695, %v441_v19  ;;  %v643_v21 = vpop.f32.mrb[1].mxu1 }
 0x285   : > { %709 = vpow2.f32 %v601_v20 }
 0x28f   : > { %v710_v22 = vpop.eup %709 }
 0x290   : > { %v448_v23 = vadd.f32 1.0, %v710_v22 }
 0x292   : > { %711 = vrcp.f32 %v448_v23 }
 0x29c   : > { %v712_v26 = vpop.eup %711 }
 0x29d   : > { %v454_v27 = vrot.slane %v712_v26, %v453_v25 }
 0x29f   : > { %460 = vbcast.lane.b32.xlu1 %v454_v27, 264  ;;  %456 = vbcast.lane.b32.xlu0 %v454_v27, 256 }
 0x2a3   : > { %464 = vbcast.lane.b32.xlu1 %v454_v27, 272  ;;  %472 = vbcast.lane.b32.xlu0 %v454_v27, 288 }
 0x2a7   : > { %468 = vbcast.lane.b32.xlu1 %v454_v27, 280  ;;  %480 = vbcast.lane.b32.xlu0 %v454_v27, 304 }
 0x2ab   : > { %476 = vbcast.lane.b32.xlu1 %v454_v27, 296 }
 0x2af   : > { %484 = vbcast.lane.b32.xlu1 %v454_v27, 312 }
 0x311   : > { %v461_v28 = vpop.permute.xlu1 %460  ;;  %v457_v29 = vpop.permute.xlu0 %456 }
 0x312   : > { %v487_v30 = vmul.f32 %v461_v28, %v960_v2  ;;  %v486_v31 = vmul.f32 %v457_v29, %v954_v0 }
 0x314   : > { %495 = vst [vmem:[%s188_s6 + $0x8] sm:$0xff] %v487_v30  ;;  %494 = vst [vmem:[%s188_s6] sm:$0xff] %v486_v31 }
 0x315   : > { %v465_v24 = vpop.permute.xlu1 %464  ;;  %v473_v32 = vpop.permute.xlu0 %472 }
 0x316   : > { %v488_v33 = vmul.f32 %v465_v24, %v956_v1  ;;  %v490_v34 = vmul.f32 %v473_v32, %v966_v4 }
 0x318   : > { %496 = vst [vmem:[%s188_s6 + $0x10] sm:$0xff] %v488_v33  ;;  %498 = vst [vmem:[%s188_s6 + $0x20] sm:$0xff] %v490_v34 }
 0x319   : > { %v469_v35 = vpop.permute.xlu1 %468  ;;  %v481_v36 = vpop.permute.xlu0 %480 }
 0x31a   : > { %v489_v2 = vmul.f32 %v469_v35, %v962_v3  ;;  %v492_v0 = vmul.f32 %v481_v36, %v972_v6 }
 0x31c   : > { %497 = vst [vmem:[%s188_s6 + $0x18] sm:$0xff] %v489_v2  ;;  %500 = vst [vmem:[%s188_s6 + $0x30] sm:$0xff] %v492_v0 }
 0x31d   : > { %v477_v37 = vpop.permute.xlu1 %476 }
 0x31e   : > { %v491_v38 = vmul.f32 %v477_v37, %v968_v5 }
 0x320   : > { %499 = vst [vmem:[%s188_s6 + $0x28] sm:$0xff] %v491_v38 }
 0x321   : > { %v485_v1 = vpop.permute.xlu1 %484 }
 0x322   : > { %v493_v3 = vmul.f32 %v485_v1, %v974_v7 }
 0x324   : > { %501 = vst [vmem:[%s188_s6 + $0x38] sm:$0xff] %v493_v3 }
 0x325   : > { %756 = shalt.err (!%p753_p2)
}
 0x326   : > { %s757_s28 = scalar_lea.hbm %s1031_s19, 1024  ;;  %s761_s10 = scalar_lea.hbm %s1079_s3, 2048 }
 0x327   : > { %p758_p4 = scmp.ne.s32.totalorder %s1031_s19, %s757_s28  ;;  %p762_p9 = scmp.lt.u32.totalorder %s1031_s19, %s1079_s3 }
 0x328   : > { %p763_p1 = scmp.lt.u32.totalorder %s761_s10, %s757_s28  ;;  %p765_p6 = scmp.lt.u32.totalorder %s757_s28, %s1031_s19 }
 0x329   : > { %p759_p5 = pnand %p758_p4, %p1086_p11 }
 0x32a   : > { %p764_p3 = por %p763_p1, %p762_p9 }
 0x32b   : > { %p760_p7 = pneg %p759_p5 }
 0x32c   : > { %p766_p12 = por %p765_p6, %p764_p3 }
 0x32e   : > { %p767_p13 = pnand %p766_p12, %p760_p7 }
 0x330   : > { %770 = shalt.err (!%p767_p13)
}
 0x331   : > { %s818_s4 = smov 128   ;;  %s819_s6 = smov 8  }
 0x332   : > { %658 = dma.vmem_to_hbm [thread:$0]  (%p1086_p11), %s1026_s9, 1024, %s1031_s19, %s503_s20, %s818_s4, %s818_s4, %s819_s6  }
 0x333 PF: > { %s531_s7 = sand.u32 1, %s797_s12   ;;  %p1087_p8 = scmp.ne.s32.totalorder %s1084_s25, 0 }
 0x334   : > { %p1088_p10 = scmp.ge.s32.totalorder %s809_s15, 2  ;;  %s532_s8 = scalar_lea.sflag [#allocation4], %s531_s7 }
 0x336   : > { %p665_p0 = pnand %p1088_p10, %p1087_p8 }
 0x338   : > { %792 = dma.done.wait (!%p665_p0), %s532_s8, 1024  }
 0x339   : > { %794 = vsyncadd (!%p665_p0), %s532_s8, 4294966272  ;;  %p16_p2 = scmp.ge.s32.totalorder %s865_s18, 4   ;;  %s1089_s12 = smov %s801_s13 }
 0x33a   : > { %s1090_s13 = smov %s805_s14  ;;  %s1091_s14 = smov %s877_s21 }
 0x33b   : > { %s1092_s15 = smov %s865_s18  ;;  %18 = sbr.rel (!%p16_p2) target bundleno = 5 (0x5), region = 77 }
 0x342   :  { %537 = vsyncpa [#allocation3], 1 }
 0x343   :  { %539 = vsyncpa [#allocation3 + $0x1], 1 }
 0x344   :  { %540 = vsyncpa [#allocation4], 1 }
 0x345   :  { %542 = vsyncpa [#allocation4 + $0x1], 1 }

</bundles_post_ra>
